<compile_context>
chip_gen: v6e
topology: v6e:2x2x1
jax: 0.10.0
libtpu: 0.0.40
codegen_flags: <defaults>
</compile_context>

<pallas_src>
import functools

import jax
import jax.numpy as jnp
from jax import lax
from jax.experimental import pallas as pl
from jax.experimental.pallas import tpu as pltpu


# ---------------------------------------------------------------------------
# Generation-aware VMEM budgets
# ---------------------------------------------------------------------------
def _vmem_budgets():
    """Return (per_x_tile_byte_budget, vmem_limit_bytes).

    Budgeted so that ~4x the x tile (double-buffered in + double-buffered out)
    plus weights/scratch fits comfortably under the scoped VMEM limit.
    """
    try:
        cap = int(getattr(pltpu.get_tpu_info(), "vmem_capacity_bytes", 0))
    except Exception:  # noqa: BLE001 - be robust if the query is unavailable
        cap = 0
    if cap >= 100 * 1024 * 1024:          # v5e / v6e: 128 MiB physical VMEM
        return 8 * 1024 * 1024, 64 * 1024 * 1024
    # v7x (64 MiB physical per TensorCore) or unknown: stay conservative.
    return 4 * 1024 * 1024, 40 * 1024 * 1024


# ---------------------------------------------------------------------------
# Kernels
# ---------------------------------------------------------------------------
def _se_rows_kernel(x_ref, w1t_ref, w2t_ref, o_ref, *, inv_l):
    """Path A: single-pass SE for a (tb, C, L) slab of full batch rows."""
    # Squeeze: mean over L.  dtype=f32 keeps accumulation in f32 without
    # materializing an f32 copy of the whole tile (matters for bf16 inputs).
    y = jnp.sum(x_ref[...], axis=-1, dtype=jnp.float32) * inv_l          # (tb, C)
    # Excitation: FC -> ReLU -> FC -> sigmoid (tiny; hidden under the DMAs).
    h = jnp.dot(y, w1t_ref[...].astype(jnp.float32),
                preferred_element_type=jnp.float32)                      # (tb, Cr)
    h = jnp.maximum(h, 0.0)
    s = jnp.dot(h, w2t_ref[...].astype(jnp.float32),
                preferred_element_type=jnp.float32)                      # (tb, C)
    s = jax.nn.sigmoid(s)
    # Scale: re-read x from VMEM (not HBM) and apply the per-(b, c) gate.
    o_ref[...] = (x_ref[...] * s[:, :, None]).astype(o_ref.dtype)


def _se_phased_kernel(x_ref, w1t_ref, w2t_ref, o_ref, acc_ref, gate_ref, *,
                      inv_l, l_total, tl):
    """Path B: fused two-phase SE.  grid = (B, 2, nl).

    p == 0: accumulate lane-kept partial sums of x over the L tiles; at the
            last L tile run the excitation MLP and store the gate
            pre-broadcast across 128 lanes in VMEM scratch.
    p == 1: re-stream the same L tiles and scale them by the resident gate.
    """
    p = pl.program_id(1)
    li = pl.program_id(2)
    nl = pl.num_programs(2)
    n_groups = tl // 128
    ragged = (l_total % tl) != 0          # static Python bool

    @pl.when((p == 0) & (li == 0))
    def _():
        acc_ref[...] = jnp.zeros_like(acc_ref)

    # ---- phase 0: partial sums with the lane dimension kept (vld + VPU adds;
    # the single cross-lane reduce is deferred to the finalize below). ----
    @pl.when(p == 0)
    def _():
        x = x_ref[...]                                          # (tb, C, tl)
        if ragged:
            # Mask lanes past the end of L on the last (partial) tile.
            nvalid = l_total - li * tl                          # >= tl inside
            lane = lax.broadcasted_iota(jnp.int32, x.shape, 2)
            x = jnp.where(lane < nvalid, x, 0)
        part = x[:, :, 0:128].astype(jnp.float32)
        for g in range(1, n_groups):
            part = part + x[:, :, g * 128:(g + 1) * 128].astype(jnp.float32)
        acc_ref[...] += part

    # ---- phase-0 finalize: one lane reduce + tiny excitation MLP. ----
    @pl.when((p == 0) & (li == nl - 1))
    def _():
        y = jnp.sum(acc_ref[...], axis=-1) * inv_l                       # (tb, C)
        h = jnp.maximum(jnp.dot(y, w1t_ref[...].astype(jnp.float32),
                                preferred_element_type=jnp.float32), 0.0)
        s = jax.nn.sigmoid(jnp.dot(h, w2t_ref[...].astype(jnp.float32),
                                   preferred_element_type=jnp.float32))
        # Pre-broadcast the gate across the 128 lanes so phase 1 is a pure
        # vld / vmul / vst stream (no per-step lane splat / relayout).
        gate_ref[...] = jnp.broadcast_to(s[:, :, None], gate_ref.shape)

    # ---- phase 1: re-stream x and scale by the resident gate. ----
    @pl.when(p == 1)
    def _():
        g128 = gate_ref[...]                                    # (tb, C, 128)
        for g in range(n_groups):
            sl = slice(g * 128, (g + 1) * 128)
            o_ref[:, :, sl] = (x_ref[:, :, sl] * g128).astype(o_ref.dtype)


# ---------------------------------------------------------------------------
# Tiling helpers
# ---------------------------------------------------------------------------
def _choose_tb(B, row_bytes, tile_budget):
    """Rows per grid step for the single-pass path."""
    # ~1-2 MiB tiles already reach ~85% of the HBM roofline; keep at least two
    # grid steps so v7x's second TensorCore gets work and DMAs overlap compute.
    target = min(tile_budget, 2 * 1024 * 1024)
    tb = max(1, min(B, target // max(1, row_bytes)))
    if B >= 2:
        tb = min(tb, (B + 1) // 2)
    # Prefer an exact divisor of B (no padded rows) when one is close enough;
    # otherwise use a cdiv grid (padded rows are per-row independent and their
    # outputs are discarded, so this stays correct).
    d = tb
    while B % d != 0:
        d -= 1
    if 2 * d >= tb:
        tb = d
    return tb, -(-B // tb)


def _choose_tl(L, C, tb, itemsize, tile_budget):
    """Lane-dense L tile for the two-phase path (multiple of 128 lanes)."""
    max_groups = 64                       # keeps the unrolled group loop small
    per_group = tb * C * 128 * itemsize
    groups = max(1, min(max_groups, tile_budget // max(1, per_group), L // 128))
    # Prefer a tile width that divides L exactly (no edge masking) if one
    # exists within 2x of the budget-optimal width.
    if L % 128 == 0:
        for g in range(groups, 0, -1):
            if (L // 128) % g == 0:
                if 2 * g >= groups:
                    return g * 128
                break
    return groups * 128


# ---------------------------------------------------------------------------
# Wrapper
# ---------------------------------------------------------------------------
def se_layer(x, w1, w2, *, tile_byte_budget=None, vmem_limit_bytes=None):
    """x: (B, C, L); w1: (C//r, C); w2: (C, C//r) (PyTorch nn.Linear layout)."""
    B, C, L = x.shape
    Cr, c_in = w1.shape
    assert c_in == C and w2.shape == (C, Cr)
    w1t = jnp.asarray(w1).T               # (C, Cr)
    w2t = jnp.asarray(w2).T               # (Cr, C)

    itemsize = jnp.dtype(x.dtype).itemsize
    auto_budget, auto_limit = _vmem_budgets()
    budget = auto_budget if tile_byte_budget is None else int(tile_byte_budget)
    vmem_limit = auto_limit if vmem_limit_bytes is None else int(vmem_limit_bytes)

    inv_l = 1.0 / float(L)
    row_bytes = C * L * itemsize
    flops = 2 * B * C * L + 4 * B * C * Cr
    transcendentals = B * C

    # ---------------- Path A: single pass (read x once, write once) --------
    if row_bytes <= budget or L < 256:
        if row_bytes > budget:
            # Degenerate shape (huge C, tiny L): one row per step; raise the
            # scoped limit to cover the double-buffered in + out pipeline.
            vmem_limit = max(vmem_limit, 4 * row_bytes + (8 << 20))
        tb, nb = _choose_tb(B, row_bytes, budget)
        # TODO(synk): for B == 1 on v7x the second TensorCore idles here; a
        # cross-core split of the L reduction would need a partial-sum combine.
        cost = pl.CostEstimate(flops=flops, transcendentals=transcendentals,
                               bytes_accessed=2 * B * C * L * itemsize)
        return pl.pallas_call(
            functools.partial(_se_rows_kernel, inv_l=inv_l),
            out_shape=jax.ShapeDtypeStruct((B, C, L), x.dtype),
            grid=(nb,),
            in_specs=[
                pl.BlockSpec((tb, C, L), lambda b: (b, 0, 0)),
                pl.BlockSpec((C, Cr), lambda b: (0, 0)),    # weights resident
                pl.BlockSpec((Cr, C), lambda b: (0, 0)),
            ],
            out_specs=pl.BlockSpec((tb, C, L), lambda b: (b, 0, 0)),
            compiler_params=pltpu.CompilerParams(
                dimension_semantics=("parallel",),
                vmem_limit_bytes=int(vmem_limit)),
            cost_estimate=cost,
        )(x, w1t, w2t)

    # ---------------- Path B: fused two-phase (single pallas_call) ---------
    tb = 1                                # rows are already > the tile budget
    tl = _choose_tl(L, C, tb, itemsize, budget)
    nl = -(-L // tl)
    cost = pl.CostEstimate(flops=flops, transcendentals=transcendentals,
                           bytes_accessed=3 * B * C * L * itemsize)
    return pl.pallas_call(
        functools.partial(_se_phased_kernel, inv_l=inv_l, l_total=L, tl=tl),
        out_shape=jax.ShapeDtypeStruct((B, C, L), x.dtype),
        grid=(B, 2, nl),
        in_specs=[
            pl.BlockSpec((tb, C, tl), lambda b, p, l: (b, 0, l)),
            pl.BlockSpec((C, Cr), lambda b, p, l: (0, 0)),
            pl.BlockSpec((Cr, C), lambda b, p, l: (0, 0)),
        ],
        # Phase 0 pins the output block index to (b, 0, 0), so no writeback of
        # untouched data happens; phase 1 walks and fills the real blocks.
        out_specs=pl.BlockSpec((tb, C, tl), lambda b, p, l: (b, 0, l * p)),
        scratch_shapes=[
            pltpu.VMEM((tb, C, 128), jnp.float32),   # lane-kept partial sums
            pltpu.VMEM((tb, C, 128), jnp.float32),   # pre-broadcast gate
        ],
        compiler_params=pltpu.CompilerParams(
            dimension_semantics=("parallel", "arbitrary", "arbitrary"),
            vmem_limit_bytes=int(vmem_limit)),
        cost_estimate=cost,
    )(x, w1t, w2t)


def se_layer_ref(x, w1, w2):
    """Pure-JAX reference matching the PyTorch module."""
    y = jnp.mean(x, axis=-1)                  # (B, C)
    h = jnp.maximum(y @ w1.T, 0.0)            # (B, C//r)
    s = jax.nn.sigmoid(h @ w2.T)              # (B, C)
    return x * s[:, :, None]


if __name__ == "__main__":
    keys = jax.random.split(jax.random.PRNGKey(0), 9)

    # ---- Case 1: small shapes -> single-pass path (grid over B only). ----
    B, C, L, r = 2, 4, 16, 2
    Cr = C // r
    x = jax.random.normal(keys[0], (B, C, L), dtype=jnp.float32)
    w1 = jax.random.normal(keys[1], (Cr, C), dtype=jnp.float32) * 0.1
    w2 = jax.random.normal(keys[2], (C, Cr), dtype=jnp.float32) * 0.1
    out = jax.block_until_ready(se_layer(x, w1, w2))
    ref = se_layer_ref(x, w1, w2)
    assert out.shape == (B, C, L)
    assert jnp.allclose(out, ref, atol=1e-5, rtol=1e-5), "single-pass mismatch"

    # ---- Case 2: non-dividing batch (padded last B tile), single pass. ----
    B2, C2, L2, r2 = 5, 16, 256, 2
    Cr2 = C2 // r2
    x2 = jax.random.normal(keys[3], (B2, C2, L2), dtype=jnp.float32)
    w1_2 = jax.random.normal(keys[4], (Cr2, C2), dtype=jnp.float32) * 0.1
    w2_2 = jax.random.normal(keys[5], (C2, Cr2), dtype=jnp.float32) * 0.1
    out2 = jax.block_until_ready(se_layer(x2, w1_2, w2_2))
    ref2 = se_layer_ref(x2, w1_2, w2_2)
    assert jnp.allclose(out2, ref2, atol=1e-5, rtol=1e-5), "padded-batch mismatch"

    # ---- Case 3: rows forced over the tile budget -> fused two-phase path. ----
    B3, C3, L3, r3 = 4, 16, 1024, 2
    Cr3 = C3 // r3
    x3 = jax.random.normal(keys[6], (B3, C3, L3), dtype=jnp.float32)
    w1_3 = jax.random.normal(keys[7], (Cr3, C3), dtype=jnp.float32) * 0.1
    w2_3 = jax.random.normal(keys[8], (C3, Cr3), dtype=jnp.float32) * 0.1
    out3 = jax.block_until_ready(
        se_layer(x3, w1_3, w2_3, tile_byte_budget=16 * 1024))
    ref3 = se_layer_ref(x3, w1_3, w2_3)
    assert jnp.allclose(out3, ref3, atol=1e-4, rtol=1e-4), "two-phase mismatch"

    # ---- Case 4: bf16 input on the single-pass path. ----
    x4 = x2.astype(jnp.bfloat16)
    out4 = jax.block_until_ready(se_layer(x4, w1_2, w2_2))
    ref4 = se_layer_ref(x4.astype(jnp.float32), w1_2, w2_2)
    assert out4.dtype == jnp.bfloat16
    assert jnp.allclose(out4.astype(jnp.float32), ref4, atol=5e-2, rtol=5e-2), \
        "bf16 mismatch"

    print("KERNEL_OK")
</pallas_src>

<mosaic_0001>
module attributes {stable_mosaic.version = 11 : i64} {
  func.func @_se_rows_kernel(%arg0: i32, %arg1: memref<1x4x16xf32, #tpu.memory_space<vmem>>, %arg2: memref<4x2xf32, #tpu.memory_space<vmem>>, %arg3: memref<2x4xf32, #tpu.memory_space<vmem>>, %arg4: memref<1x4x16xf32, #tpu.memory_space<vmem>>) attributes {dimension_semantics = [#tpu.dimension_semantics<parallel>], iteration_bounds = array<i64: 2>, scalar_prefetch = 0 : i64, scratch_operands = 0 : i64, tpu.core_type = #tpu.core_type<tc>, window_params = [{transform_indices = @transform_0, window_bounds = array<i64: 1, 4, 16>}, {pipeline_mode = #tpu.pipeline_mode<synchronous>, transform_indices = @transform_1, window_bounds = array<i64: 4, 2>}, {pipeline_mode = #tpu.pipeline_mode<synchronous>, transform_indices = @transform_2, window_bounds = array<i64: 2, 4>}, {transform_indices = @transform_3, window_bounds = array<i64: 1, 4, 16>}]} {
    %c0 = arith.constant 0 : index
    %c0_0 = arith.constant 0 : index
    %c0_1 = arith.constant 0 : index
    %0 = vector.load %arg1[%c0, %c0_0, %c0_1] : memref<1x4x16xf32, #tpu.memory_space<vmem>>, vector<1x4x16xf32>
    %cst = arith.constant dense<0.000000e+00> : vector<1x4xf32>
    %1 = vector.multi_reduction <add>, %0, %cst [2] : vector<1x4x16xf32> to vector<1x4xf32>
    %cst_2 = arith.constant 6.250000e-02 : f32
    %2 = vector.broadcast %cst_2 : f32 to vector<1x4xf32>
    %3 = arith.mulf %1, %2 : vector<1x4xf32>
    %c0_3 = arith.constant 0 : index
    %c0_4 = arith.constant 0 : index
    %4 = vector.load %arg2[%c0_3, %c0_4] : memref<4x2xf32, #tpu.memory_space<vmem>>, vector<4x2xf32>
    %cst_5 = arith.constant dense<0.000000e+00> : vector<1x2xf32>
    %5 = tpu.matmul %3, %4, %cst_5 {dimension_numbers = #tpu.dot_dimension_numbers<[1], [0], [0], [1], [0, 0, 1, 1], [], []>} : vector<1x4xf32>, vector<4x2xf32>, vector<1x2xf32> -> vector<1x2xf32>
    %cst_6 = arith.constant 0.000000e+00 : f32
    %6 = vector.broadcast %cst_6 : f32 to vector<1x2xf32>
    %7 = arith.maximumf %5, %6 : vector<1x2xf32>
    %c0_7 = arith.constant 0 : index
    %c0_8 = arith.constant 0 : index
    %8 = vector.load %arg3[%c0_7, %c0_8] : memref<2x4xf32, #tpu.memory_space<vmem>>, vector<2x4xf32>
    %cst_9 = arith.constant dense<0.000000e+00> : vector<1x4xf32>
    %9 = tpu.matmul %7, %8, %cst_9 {dimension_numbers = #tpu.dot_dimension_numbers<[1], [0], [0], [1], [0, 0, 1, 1], [], []>} : vector<1x2xf32>, vector<2x4xf32>, vector<1x4xf32> -> vector<1x4xf32>
    %10 = arith.negf %9 : vector<1x4xf32>
    %11 = math.exp %10 : vector<1x4xf32>
    %cst_10 = arith.constant 1.000000e+00 : f32
    %12 = vector.broadcast %cst_10 : f32 to vector<1x4xf32>
    %13 = arith.addf %12, %11 : vector<1x4xf32>
    %14 = arith.divf %12, %13 : vector<1x4xf32>
    %c0_11 = arith.constant 0 : index
    %c0_12 = arith.constant 0 : index
    %c0_13 = arith.constant 0 : index
    %15 = vector.load %arg1[%c0_11, %c0_12, %c0_13] : memref<1x4x16xf32, #tpu.memory_space<vmem>>, vector<1x4x16xf32>
    %16 = vector.shape_cast %14 : vector<1x4xf32> to vector<1x4x1xf32>
    %17 = vector.broadcast %16 : vector<1x4x1xf32> to vector<1x4x16xf32>
    %18 = arith.mulf %15, %17 : vector<1x4x16xf32>
    %c0_14 = arith.constant 0 : index
    %c0_15 = arith.constant 0 : index
    %c0_16 = arith.constant 0 : index
    %19 = vector.load %arg4[%c0_14, %c0_15, %c0_16] : memref<1x4x16xf32, #tpu.memory_space<vmem>>, vector<1x4x16xf32>
    tpu.vector_store %arg4[%c0_14, %c0_15, %c0_16], %18 {strides = array<i32>} : memref<1x4x16xf32, #tpu.memory_space<vmem>>, vector<1x4x16xf32>,
    return
  }
  func.func @transform_0(%arg0: i32) -> (i32, i32, i32) {
    %c0_i32 = arith.constant 0 : i32
    %c0_i32_0 = arith.constant 0 : i32
    %c0_i32_1 = arith.constant 0 : i32
    return %arg0, %c0_i32, %c0_i32_0 : i32, i32, i32
  }
  func.func @transform_1(%arg0: i32) -> (i32, i32) {
    %c0_i32 = arith.constant 0 : i32
    %c0_i32_0 = arith.constant 0 : i32
    %c0_i32_1 = arith.constant 0 : i32
    return %c0_i32, %c0_i32_0 : i32, i32
  }
  func.func @transform_2(%arg0: i32) -> (i32, i32) {
    %c0_i32 = arith.constant 0 : i32
    %c0_i32_0 = arith.constant 0 : i32
    %c0_i32_1 = arith.constant 0 : i32
    return %c0_i32, %c0_i32_0 : i32, i32
  }
  func.func @transform_3(%arg0: i32) -> (i32, i32, i32) {
    %c0_i32 = arith.constant 0 : i32
    %c0_i32_0 = arith.constant 0 : i32
    %c0_i32_1 = arith.constant 0 : i32
    return %arg0, %c0_i32, %c0_i32_0 : i32, i32, i32
  }
}

</mosaic_0001>

<bundles_post_ra>
// kernel: tpu_custom_call.1
= control target key start
LH: loop header
LB: loop body
LE: loop exit
PB: predicated region body
PF: predicated region fallthrough
CT: control target
= control target key end

     0   :  { %8 = vsyncpa [#allocation3], 0  ;;  %s810_s0 = inlined_call_operand.hbm [shape: f32[2,4,16], index: 0, kind: input, shape index: {}]   ;;  %s811_s1 = inlined_call_operand.vmem [shape: f32[4,2], index: 1, kind: input, shape index: {}]   ;;  %s812_s2 = inlined_call_operand.vmem [shape: f32[2,4], index: 2, kind: input, shape index: {}]   ;;  %s813_s3 = inlined_call_operand.hbm [shape: f32[2,4,16], index: 3, kind: output, shape index: {}]  }
   0x1   :  { %10 = vsyncpa [#allocation3 + $0x1], 0 }
   0x2   :  { %11 = vsyncpa [#allocation4], 0 }
   0x3   :  { %13 = vsyncpa [#allocation4 + $0x1], 0  ;;  %s657_s12 = smov 0   ;;  %s659_s13 = smov 0  }
   0x4   :  { %s661_s14 = smov 0   ;;  %s663_s15 = smov 0  }
   0x5 LB: > { %s678_s16 = sadd.s32 4294967295, %s631_s15   ;;  %s456_s17 = sadd.s32 4294967294, %s631_s15   ;;  %s631_s15 = sphi %s663_s15, %s830_s15   ;;  %s627_s14 = sphi %s661_s14, %s829_s14   ;;  %s623_s13 = sphi %s659_s13, %s828_s13   ;;  %s619_s12 = sphi %s657_s12, %s827_s12  }
   0x6   : > { %s682_s18 = sadd.s32 1, %s631_s15   ;;  %s26_s19 = sadd.s32 1, %s627_s14 }
   0x7   : > { %s23_s20 = ssub.s32 %s631_s15, %s682_s18  ;;  %p33_p0 = scmp.ne.s32.totalorder %s627_s14, %s623_s13 }
   0x8   : > { %p24_p1 = scmp.eq.s32.totalorder %s23_s20, 0  ;;  %p34_p2 = scmp.eq.s32.totalorder %s631_s15, 0 }
   0x9   : > { %p39_p3 = scmp.ne.s32.totalorder %s623_s13, %s619_s12  ;;  %p40_p4 = scmp.eq.s32.totalorder %s678_s16, 0 }
   0xa   : > { %s694_s21 = scalar_select %p24_p1, %s627_s14, %s26_s19  }
   0xb   : > { %p696_p5 = por %p34_p2, %p33_p0  ;;  %p700_p6 = por %p40_p4, %p39_p3 }
   0xc   : > { %p105_p7 = scmp.eq.s32.totalorder %s678_s16, 1  ;;  %p111_p8 = scmp.eq.s32.totalorder %s456_s17, 1 }
   0xd   : > { %s817_s23 = scalar_select %p700_p6, 1, 0 }
   0xe   : > { %p499_p10 = scmp.lt.s32.totalorder %s631_s15, 2  ;;  %p707_p11 = por %p105_p7, %p33_p0 }
   0xf   : > { %p711_p12 = por %p111_p8, %p39_p3  ;;  %s137_s26 = sand.u32 1, %s627_s14  }
  0x10   : > { %s818_s24 = scalar_select %p707_p11, 1, 0 }
  0x11   : > { %s819_s25 = scalar_select %p711_p12, 1, 0 }
  0x12   : > { %s460_s27 = sshll.u32 %s631_s15, 6  ;;  %s459_s28 = sshll.u32 %s137_s26, 2 }
  0x13   : > { %s720_s4 = scalar_lea.hbm %s810_s0, %s460_s27  ;;  %s141_s5 = scalar_lea.vmem [#allocation2], %s459_s28 }
  0x14   : > { %s148_s6 = sshll.u32 %s141_s5, 4  ;;  %p724_p13 = pnand %p499_p10, %p696_p5  ;;  %s728_s6 = int_to_ptr.vmem [resolvable:$true] %s148_s6 }
  0x15   : > { %s138_s8 = scalar_lea.sflag [#allocation3], %s137_s26  ;;  %s539_s9 = scalar_lea.hbm %s720_s4, 64 }
  0x16   : > { %p540_p2 = scmp.ne.s32.totalorder %s720_s4, %s539_s9  ;;  %p541_p3 = pneg %p724_p13 }
  0x17   : > { %s544_s17 = scalar_lea.hbm %s810_s0, 128  ;;  %p545_p5 = scmp.lt.s32.totalorder %s720_s4, %s810_s0 }
  0x18   : > { %p542_p4 = pnand %p541_p3, %p540_p2  ;;  %p546_p8 = scmp.lt.s32.totalorder %s544_s17, %s539_s9 }
  0x1a   : > { %p543_p7 = pneg %p542_p4  ;;  %p547_p10 = por %p546_p8, %p545_p5 }
  0x1c   : > { %p548_p9 = pnand %p547_p10, %p543_p7 }
  0x1e   : > { %551 = shalt.err (!%p548_p9)
}
  0x1f   : > { %s552_s22 = scalar_lea.vmem %s728_s6, 64  ;;  %s633_s26 = smov [#allocation2]  }
  0x20   : > { %p553_p0 = scmp.ne.s32.totalorder %s728_s6, %s552_s22  ;;  %s557_s27 = sshll.u32 %s633_s26, 4  ;;  %s558_s27 = int_to_ptr.vmem [resolvable:$false] %s557_s27 }
  0x21   : > { %s559_s28 = scalar_lea.vmem %s558_s27, 128  ;;  %p560_p4 = scmp.lt.s32.totalorder %s728_s6, %s558_s27 }
  0x22   : > { %p555_p1 = pnand %p553_p0, %p541_p3  ;;  %p561_p12 = scmp.lt.s32.totalorder %s559_s28, %s552_s22 }
  0x24   : > { %p556_p2 = pneg %p555_p1  ;;  %p562_p11 = por %p561_p12, %p560_p4 }
  0x26   : > { %p563_p6 = pnand %p562_p11, %p556_p2 }
  0x28   : > { %566 = shalt.err (!%p563_p6)
}
  0x29   : > { %494 = dma.hbm_to_vmem [thread:$0]  (!%p724_p13), %s720_s4, 64, %s728_s6, %s138_s8  }
  0x2a   : > { %p821_p9 = scmp.lt.s32.totalorder %s631_s15, 3  ;;  %p822_p7 = scmp.ge.s32.totalorder %s631_s15, 1 }
  0x2c   : > { %p154_p0 = pnand %p822_p7, %p821_p9 }
  0x2d   : > { %s755_s29 = sand.u32 (!%p154_p0), 1, %s623_s13   ;;  %p823_p6 = scmp.ne.s32.totalorder (!%p154_p0), %s817_s23, 0 }
  0x2e   : > { %157 = sbr.rel (%p154_p0) target bundleno = 748 (0x2ec), region = 32  ;;  %s462_s30 = sshll.u32 (!%p154_p0), %s755_s29, 2 }
  0x2f   : > { %s160_s5 = scalar_lea.sflag (!%p154_p0), [#allocation3], %s755_s29  ;;  %s163_s7 = scalar_lea.vmem (!%p154_p0), [#allocation2], %s462_s30 }
  0x33   : > { %610 = dma.done.wait (%p823_p6), %s160_s5, 64  }
  0x34   : > { %612 = vsyncadd (%p823_p6), %s160_s5, 4294967232  ;;  %vm187_vm0 = vcmask 125952   ;;  %v186_v0 = vld [vmem:[%s163_s7] sm:$0xf]  ;;  %v634_v2 = vmov 0.0   ;;  %vm203_vm1 = vcmask 1043456   ;;  %v194_v4 = vlaneseq }
  0x35   : > { %v188_v1 = vsel %vm187_vm0, %v186_v0, 0.0  ;;  %477 = vmatprep.subr.mxu0 %v634_v2  ;;  %v192_v3 = vld [vmem:[%s811_s1] sm:$0xf]  ;;  %482 = vmatprep.subr.mxu1 %v634_v2  ;;  %vm635_vm2 = vmmov 0   ;;  %vm200_vm3 = vcmask 31744   ;;  %vm283_vm4 = vcmask 1041408  }
  0x36   : > { %189 = vadd.xlane.f32.xlu0 %v188_v1  ;;  %478 = vmatpush3.msk.msra.mxu0 %vm203_vm1, %v192_v3  ;;  %v195_v5 = vand.u32 127, %v194_v4  ;;  %v197_v6 = vshrl.u32 %v194_v4, 7  ;;  %v278_v11 = vld [vmem:[%s812_s2] sm:$0x3]  ;;  %vm279_vm5 = vcmask 15360   ;;  %s470_s9 = sshll.u32 %s678_s16, 6 }
  0x37   : > { %479 = vmatprep.mubr.msk.f32.mxu0 %vm635_vm2, %v634_v2  ;;  %484 = vmatprep.mubr.msk.f32.mxu1 %vm635_vm2, %v634_v2  ;;  %s185_s10 = scalar_lea.vmem [#allocation5], %s462_s30  ;;  %s384_s20 = scalar_lea.hbm %s813_s3, %s470_s9 }
  0x38   : > { %v198_v7 = vsub.s32 %v195_v5, %v197_v6  ;;  %483 = vmatpush3.msk.msra.mxu1 %vm283_vm4, %v278_v11  ;;  %v365_v20 = vsub.s32 0, %v197_v6  ;;  %s386_s11 = sshll.u32 %s185_s10, 4  ;;  %s373_s22 = scalar_lea.sflag [#allocation4], %s755_s29  ;;  %s387_s11 = int_to_ptr.vmem [resolvable:$true] %s386_s11 }
  0x39   : > { %s567_s26 = scalar_lea.vmem %s387_s11, 64  ;;  %p824_p12 = scmp.ne.s32.totalorder %s818_s24, 0 }
  0x3a   : > { %p568_p11 = scmp.ne.s32.totalorder %s387_s11, %s567_s26  ;;  %s636_s27 = smov [#allocation5]  }
  0x3b   : > { %s571_s16 = sshll.u32 %s636_s27, 4  ;;  %s572_s16 = int_to_ptr.vmem [resolvable:$false] %s571_s16 }
  0x3c   : > { %p569_p13 = pnand %p568_p11, %p824_p12  ;;  %s573_s28 = scalar_lea.vmem %s572_s16, 128 }
  0x3d   : > { %p574_p3 = scmp.lt.s32.totalorder %s387_s11, %s572_s16  ;;  %p575_p5 = scmp.lt.s32.totalorder %s573_s28, %s567_s26 }
  0x3e   : > { %p570_p1 = pneg %p569_p13 }
  0x3f   : > { %p576_p8 = por %p575_p5, %p574_p3 }
  0x41   : > { %p577_p10 = pnand %p576_p8, %p570_p1 }
  0xbf   : > { %v190_v8 = vpop.xlane.xlu0 %189 }
  0xc0   : > { %v191_v9 = vmul.f32 0.0625, %v190_v8 }
  0xc2   : > { %v199_v10 = vrot.slane %v191_v9, %v198_v7 }
  0xc4   : > { %480 = vmatmul.mubr.msk.f32.vlgmr.msra.gmra.mxu0 %vm200_vm3, %v199_v10 }
 0x184   : > { %v273_v12 = vpop.f32.mrf.mxu0 }
 0x185   : > { %v277_v13 = vmax.f32 %v273_v12, 0.0 }
 0x186   : > { %v481_v14 = vpop.f32.mrf.mxu0 }
 0x187   : > { %485 = vmatmul.mubr.msk.f32.vlgmr.msra.gmra.mxu1 %vm279_vm5, %v277_v13 }
 0x247   : > { %v353_v15 = vpop.f32.mrf.mxu1 }
 0x248   : > { %v468_v16 = vmul.f32 -1.442695, %v353_v15 }
 0x249   : > { %v486_v17 = vpop.f32.mrf.mxu1 }
 0x24a   : > { %535 = vpow2.f32 %v468_v16 }
 0x257   : > { %v536_v18 = vpop.eup %535 }
 0x258   : > { %v360_v19 = vadd.f32 1.0, %v536_v18 }
 0x25a   : > { %537 = vrcp.f32 %v360_v19 }
 0x267   : > { %v538_v21 = vpop.eup %537 }
 0x268   : > { %v366_v22 = vrot.slane %v538_v21, %v365_v20 }
 0x26a   : > { %368 = vbcast.lane.b32.xlu0 %v366_v22, 256 }
 0x2dc   : > { %v369_v23 = vpop.permute.xlu0 %368 }
 0x2dd   : > { %v370_v24 = vmul.f32 %v369_v23, %v186_v0 }
 0x2df   : > { %371 = vst.msk [vmem:[%s185_s10] sm:$0xf] %vm187_vm0, %v370_v24 }
 0x2e0   : > { %580 = shalt.err (!%p577_p10)
}
 0x2e1   : > { %s581_s30 = scalar_lea.hbm %s384_s20, 64  ;;  %s585_s7 = scalar_lea.hbm %s813_s3, 128 }
 0x2e2   : > { %p582_p2 = scmp.ne.s32.totalorder %s384_s20, %s581_s30  ;;  %p586_p7 = scmp.lt.s32.totalorder %s384_s20, %s813_s3 }
 0x2e3   : > { %p587_p0 = scmp.lt.s32.totalorder %s585_s7, %s581_s30 }
 0x2e4   : > { %p583_p4 = pnand %p582_p2, %p824_p12 }
 0x2e5   : > { %p588_p6 = por %p587_p0, %p586_p7 }
 0x2e6   : > { %p584_p9 = pneg %p583_p4 }
 0x2e8   : > { %p589_p11 = pnand %p588_p6, %p584_p9 }
 0x2ea   : > { %592 = shalt.err (!%p589_p11)
}
 0x2eb   : > { %489 = dma.vmem_to_hbm [thread:$0]  (%p824_p12), %s387_s11, 64, %s384_s20, %s373_s22  }
 0x2ec PF: > { %s398_s23 = sand.u32 1, %s619_s12   ;;  %p825_p13 = scmp.ne.s32.totalorder %s819_s25, 0 }
 0x2ed   : > { %p826_p1 = scmp.ge.s32.totalorder %s631_s15, 2  ;;  %s399_s8 = scalar_lea.sflag [#allocation4], %s398_s23 }
 0x2ef   : > { %p496_p3 = pnand %p826_p1, %p825_p13 }
 0x2f1   : > { %p497_p5 = pneg %p496_p3 }
 0x2f3   : > { %614 = dma.done.wait (%p497_p5), %s399_s8, 64  }
 0x2f4   : > { %616 = vsyncadd (%p497_p5), %s399_s8, 4294967232  ;;  %p16_p8 = scmp.ge.s32.totalorder %s682_s18, 4   ;;  %s827_s12 = smov %s623_s13 }
 0x2f5   : > { %s828_s13 = smov %s627_s14  ;;  %s829_s14 = smov %s694_s21 }
 0x2f6   : > { %s830_s15 = smov %s682_s18  ;;  %18 = sbr.rel (!%p16_p8) target bundleno = 5 (0x5), region = 77 }
 0x2fb   :  { %404 = vsyncpa [#allocation3], 1 }
 0x2fc   :  { %406 = vsyncpa [#allocation3 + $0x1], 1 }
 0x2fd   :  { %407 = vsyncpa [#allocation4], 1 }
 0x2fe   :  { %409 = vsyncpa [#allocation4 + $0x1], 1 }

</bundles_post_ra>
